<compile_context>
chip_gen: v5e
topology: v5e:2x2
jax: 0.10.0
libtpu: 0.0.40
codegen_flags: <defaults>
</compile_context>

<pallas_src>
import jax
import jax.numpy as jnp
from jax.experimental import pallas as pl
from jax.experimental.pallas import tpu as pltpu

BN_EPS = 1e-5
_VMEM_LIMIT_BYTES = 64 * 1024 * 1024   # explicit scoped-VMEM cap (safe on v5e/v6e/v7x)
_VMEM_TILE_BUDGET = 40 * 1024 * 1024   # what the tiling math is allowed to consume


def _round_up(x, m):
    return (x + m - 1) // m * m


# ---------------- Phase 0: conv-as-matmul + per-tile partial channel stats ----------------
def _conv_stats_kernel(p_ref, w_ref, y_ref, stats_ref):
    # p_ref: (TM, KP) bf16 im2col tile; w_ref: (KP, CP) bf16 resident weights
    # y_ref: (TM, CP) bf16 raw conv tile; stats_ref: (2, CP) f32 per-tile [sum; sumsq]
    y = jnp.dot(p_ref[...], w_ref[...], preferred_element_type=jnp.float32)
    y_ref[...] = y.astype(y_ref.dtype)
    # Stats from the f32 accumulator (before downcast).  Zero-padded patch rows give
    # exactly-zero y rows (no bias), so they contribute nothing; true M divides in the glue.
    stats_ref[0:1, :] = jnp.sum(y, axis=0, keepdims=True)
    stats_ref[1:2, :] = jnp.sum(y * y, axis=0, keepdims=True)


# ---------------- Phase 1: fused BatchNorm scale/shift + ReLU (streaming) ----------------
def _bn_relu_kernel(y_ref, scale_ref, shift_ref, o_ref):
    y = y_ref[...].astype(jnp.float32)
    o_ref[...] = jnp.maximum(y * scale_ref[...] + shift_ref[...], 0.0).astype(o_ref.dtype)


def _im2col_nhwc(x_nhwc, ksize, stride, padding):
    """Extract ksize x ksize patches -> (N, Ho, Wo, ksize*ksize*Cin)."""
    n, h, w, cin = x_nhwc.shape
    xp = jnp.pad(x_nhwc, ((0, 0), (padding, padding), (padding, padding), (0, 0)))
    ho = (h + 2 * padding - ksize) // stride + 1
    wo = (w + 2 * padding - ksize) // stride + 1
    patches = []
    for kh in range(ksize):
        for kw in range(ksize):
            patches.append(
                xp[:, kh: kh + stride * ho: stride, kw: kw + stride * wo: stride, :])
    patches = jnp.stack(patches, axis=3)  # (N, Ho, Wo, 9, Cin)
    return patches.reshape(n, ho, wo, ksize * ksize * cin), ho, wo


def _derive_tm(kp, cp, bytes_per_elem, m, tm_max):
    """Largest row tile that fits the VMEM budget (double-buffered in/out, 2x weight)."""
    fixed = 2 * kp * cp * bytes_per_elem          # resident weight (counted double-buffered)
    per_row = 2 * (kp + cp) * bytes_per_elem      # double-buffered patch + y tiles
    tm = (_VMEM_TILE_BUDGET - fixed) // per_row
    tm = int(max(16, min(tm, tm_max, _round_up(m, 16))))
    return max(16, tm - tm % 16)                  # bf16-friendly (multiple of 16)


def fc3_basic_block(x_nchw, conv_w, conv_b, bn_gamma, bn_beta, *, stride=1,
                    padding=0, tm_max=1024):
    """x_nchw: (N, Cin, H, W); conv_w: (Cout, Cin, 3, 3) (PyTorch OIHW)."""
    # conv_b accepted for API parity but unused: train-mode BN cancels it exactly.
    del conv_b
    n, cin, h, w = x_nchw.shape
    cout, _, ksize, _ = conv_w.shape

    # NCHW -> NHWC in bf16 so the patch matrix (and all kernel DMA traffic) is half-width.
    x_nhwc = jnp.transpose(x_nchw, (0, 2, 3, 1)).astype(jnp.bfloat16)
    patches, ho, wo = _im2col_nhwc(x_nhwc, ksize, stride, padding)

    m = n * ho * wo
    k = ksize * ksize * cin
    kp = _round_up(k, 128)          # lane-dense contraction dim
    cp = _round_up(cout, 128)       # lane-dense output dim

    tm = _derive_tm(kp, cp, 2, m, tm_max)
    m_pad = _round_up(m, tm)
    n_tiles = m_pad // tm

    # Single pad (rows to m_pad, K to kp); no extra zero-buffer copy.
    p2d = jnp.pad(patches.reshape(m, k), ((0, m_pad - m), (0, kp - k)))
    w2d = jnp.pad(jnp.transpose(conv_w, (2, 3, 1, 0)).reshape(k, cout),
                  ((0, kp - k), (0, cp - cout))).astype(jnp.bfloat16)
    g2d = jnp.pad(bn_gamma.reshape(1, cout).astype(jnp.float32),
                  ((0, 0), (0, cp - cout)))
    b2d = jnp.pad(bn_beta.reshape(1, cout).astype(jnp.float32),
                  ((0, 0), (0, cp - cout)))

    cparams = pltpu.CompilerParams(
        dimension_semantics=("parallel",),
        vmem_limit_bytes=_VMEM_LIMIT_BYTES)

    # ---- Phase 0: bf16 MXU matmul (f32 acc) + per-tile partial channel stats ----
    y_raw, part = pl.pallas_call(
        _conv_stats_kernel,
        out_shape=(jax.ShapeDtypeStruct((m_pad, cp), jnp.bfloat16),
                   jax.ShapeDtypeStruct((n_tiles, 2, cp), jnp.float32)),
        grid=(n_tiles,),
        in_specs=[
            pl.BlockSpec((tm, kp), lambda i: (i, 0)),    # patch tile: pipelined over M
            pl.BlockSpec((kp, cp), lambda i: (0, 0)),    # weights: resident
        ],
        out_specs=(
            pl.BlockSpec((tm, cp), lambda i: (i, 0)),            # raw conv output tile
            pl.BlockSpec((None, 2, cp), lambda i: (i, 0, 0)),    # per-tile partial stats
        ),
        compiler_params=cparams,
    )(p2d, w2d)

    # ---- Tiny JAX glue: reduce partials, fold BN into a single per-channel scale/shift ----
    # Note: E[y^2]-mean^2 in f32 can lose precision when |mean| >> std at very large M.
    s = jnp.sum(part, axis=0)                               # (2, cp) f32
    inv_m = 1.0 / float(m)                                  # true M (padded rows are zeros)
    mean = s[0:1, :] * inv_m
    var = jnp.maximum(s[1:2, :] * inv_m - mean * mean, 0.0)
    scale = g2d * jax.lax.rsqrt(var + BN_EPS)               # (1, cp)
    shift = b2d - mean * scale                              # (1, cp)

    # ---- Phase 1: streaming FMA + ReLU, written in place over y_raw's HBM buffer ----
    out2d = pl.pallas_call(
        _bn_relu_kernel,
        out_shape=jax.ShapeDtypeStruct((m_pad, cp), jnp.bfloat16),
        grid=(n_tiles,),
        in_specs=[
            pl.BlockSpec((tm, cp), lambda i: (i, 0)),
            pl.BlockSpec((1, cp), lambda i: (0, 0)),
            pl.BlockSpec((1, cp), lambda i: (0, 0)),
        ],
        out_specs=pl.BlockSpec((tm, cp), lambda i: (i, 0)),
        input_output_aliases={0: 0},
        compiler_params=cparams,
    )(y_raw, scale, shift)

    out = out2d[:m, :cout].astype(jnp.float32).reshape(n, ho, wo, cout)
    # Module semantics return NCHW; if the caller accepts NHWC, drop this transpose.
    return jnp.transpose(out, (0, 3, 1, 2))


def _reference_jax(x_nchw, conv_w, conv_b, bn_gamma, bn_beta, *, stride=1, padding=0):
    y = jax.lax.conv_general_dilated(
        x_nchw.astype(jnp.float32),
        conv_w.astype(jnp.float32),
        window_strides=(stride, stride),
        padding=[(padding, padding), (padding, padding)],
        dimension_numbers=("NCHW", "OIHW", "NCHW"),
    ) + conv_b[None, :, None, None]
    mean = y.mean(axis=(0, 2, 3), keepdims=True)
    var = ((y - mean) ** 2).mean(axis=(0, 2, 3), keepdims=True)
    y = (y - mean) / jnp.sqrt(var + BN_EPS)
    y = y * bn_gamma[None, :, None, None] + bn_beta[None, :, None, None]
    return jnp.maximum(y, 0.0)


if __name__ == "__main__":
    # Small shapes consistent with the module: N=2, Cin=4, H=W=16, Cout=8, stride=1, padding=0
    key = jax.random.PRNGKey(0)
    k_x, k_w, k_b, k_g, k_be = jax.random.split(key, 5)

    N, Cin, H, W, Cout = 2, 4, 16, 16, 8
    x = jax.random.normal(k_x, (N, Cin, H, W), dtype=jnp.float32)

    conv_w = 0.1 * jax.random.normal(k_w, (Cout, Cin, 3, 3), dtype=jnp.float32)
    conv_b = 0.1 * jax.random.normal(k_b, (Cout,), dtype=jnp.float32)
    bn_gamma = 1.0 + 0.05 * jax.random.normal(k_g, (Cout,), dtype=jnp.float32)
    bn_beta = 0.05 * jax.random.normal(k_be, (Cout,), dtype=jnp.float32)

    # tm_max=128 so the tiny demo exercises a multi-tile grid (M=392 -> 4 tiles of 128);
    # real shapes default to the VMEM-budget-derived tile (up to 1024 rows).
    out = fc3_basic_block(x, conv_w, conv_b, bn_gamma, bn_beta,
                          stride=1, padding=0, tm_max=128)
    out = jax.block_until_ready(out)

    ref = _reference_jax(x, conv_w, conv_b, bn_gamma, bn_beta, stride=1, padding=0)
    assert out.shape == (N, Cout, H - 2, W - 2), out.shape
    err = float(jnp.max(jnp.abs(out - ref)))
    # bf16 operands / intermediate buffer -> loosened tolerance vs the f32 reference.
    assert jnp.allclose(out, ref, atol=5e-2, rtol=5e-2), err

    print("KERNEL_OK")
</pallas_src>

<mosaic_0001>
module attributes {stable_mosaic.version = 11 : i64} {
  func.func @_conv_stats_kernel(%arg0: i32, %arg1: memref<128x128xbf16, #tpu.memory_space<vmem>>, %arg2: memref<128x128xbf16, #tpu.memory_space<vmem>>, %arg3: memref<128x128xbf16, #tpu.memory_space<vmem>>, %arg4: memref<1x2x128xf32, #tpu.memory_space<vmem>>) attributes {dimension_semantics = [#tpu.dimension_semantics<parallel>], iteration_bounds = array<i64: 4>, scalar_prefetch = 0 : i64, scratch_operands = 0 : i64, tpu.core_type = #tpu.core_type<tc>, window_params = [{transform_indices = @transform_0, window_bounds = array<i64: 128, 128>}, {pipeline_mode = #tpu.pipeline_mode<synchronous>, transform_indices = @transform_1, window_bounds = array<i64: 128, 128>}, {transform_indices = @transform_2, window_bounds = array<i64: 128, 128>}, {transform_indices = @transform_3, window_bounds = array<i64: 1, 2, 128>}]} {
    %c0 = arith.constant 0 : index
    %c0_0 = arith.constant 0 : index
    %0 = vector.load %arg1[%c0, %c0_0] : memref<128x128xbf16, #tpu.memory_space<vmem>>, vector<128x128xbf16>
    %c0_1 = arith.constant 0 : index
    %c0_2 = arith.constant 0 : index
    %1 = vector.load %arg2[%c0_1, %c0_2] : memref<128x128xbf16, #tpu.memory_space<vmem>>, vector<128x128xbf16>
    %cst = arith.constant dense<0.000000e+00> : vector<128x128xf32>
    %2 = tpu.matmul %0, %1, %cst {dimension_numbers = #tpu.dot_dimension_numbers<[1], [0], [0], [1], [0, 0, 1, 1], [], []>} : vector<128x128xbf16>, vector<128x128xbf16>, vector<128x128xf32> -> vector<128x128xf32>
    %3 = arith.truncf %2 : vector<128x128xf32> to vector<128x128xbf16>
    %c0_3 = arith.constant 0 : index
    %c0_4 = arith.constant 0 : index
    %4 = vector.load %arg3[%c0_3, %c0_4] : memref<128x128xbf16, #tpu.memory_space<vmem>>, vector<128x128xbf16>
    tpu.vector_store %arg3[%c0_3, %c0_4], %3 {strides = array<i32>} : memref<128x128xbf16, #tpu.memory_space<vmem>>, vector<128x128xbf16>,
    %cst_5 = arith.constant dense<0.000000e+00> : vector<128xf32>
    %5 = vector.multi_reduction <add>, %2, %cst_5 [0] : vector<128x128xf32> to vector<128xf32>
    %6 = vector.shape_cast %5 : vector<128xf32> to vector<1x128xf32>
    %c0_6 = arith.constant 0 : index
    %c0_7 = arith.constant 0 : index
    %c0_8 = arith.constant 0 : index
    %7 = vector.load %arg4[%c0_6, %c0_7, %c0_8] : memref<1x2x128xf32, #tpu.memory_space<vmem>>, vector<1x1x128xf32>
    %8 = vector.shape_cast %7 : vector<1x1x128xf32> to vector<1x128xf32>
    %9 = vector.shape_cast %6 : vector<1x128xf32> to vector<1x1x128xf32>
    tpu.vector_store %arg4[%c0_6, %c0_7, %c0_8], %9 {strides = array<i32>} : memref<1x2x128xf32, #tpu.memory_space<vmem>>, vector<1x1x128xf32>,
    %10 = arith.mulf %2, %2 : vector<128x128xf32>
    %cst_9 = arith.constant dense<0.000000e+00> : vector<128xf32>
    %11 = vector.multi_reduction <add>, %10, %cst_9 [0] : vector<128x128xf32> to vector<128xf32>
    %12 = vector.shape_cast %11 : vector<128xf32> to vector<1x128xf32>
    %c0_10 = arith.constant 0 : index
    %c1 = arith.constant 1 : index
    %c0_11 = arith.constant 0 : index
    %13 = vector.load %arg4[%c0_10, %c1, %c0_11] : memref<1x2x128xf32, #tpu.memory_space<vmem>>, vector<1x1x128xf32>
    %14 = vector.shape_cast %13 : vector<1x1x128xf32> to vector<1x128xf32>
    %15 = vector.shape_cast %12 : vector<1x128xf32> to vector<1x1x128xf32>
    tpu.vector_store %arg4[%c0_10, %c1, %c0_11], %15 {strides = array<i32>} : memref<1x2x128xf32, #tpu.memory_space<vmem>>, vector<1x1x128xf32>,
    return
  }
  func.func @transform_0(%arg0: i32) -> (i32, i32) {
    %c0_i32 = arith.constant 0 : i32
    %c0_i32_0 = arith.constant 0 : i32
    return %arg0, %c0_i32 : i32, i32
  }
  func.func @transform_1(%arg0: i32) -> (i32, i32) {
    %c0_i32 = arith.constant 0 : i32
    %c0_i32_0 = arith.constant 0 : i32
    %c0_i32_1 = arith.constant 0 : i32
    return %c0_i32, %c0_i32_0 : i32, i32
  }
  func.func @transform_2(%arg0: i32) -> (i32, i32) {
    %c0_i32 = arith.constant 0 : i32
    %c0_i32_0 = arith.constant 0 : i32
    return %arg0, %c0_i32 : i32, i32
  }
  func.func @transform_3(%arg0: i32) -> (i32, i32, i32) {
    %c0_i32 = arith.constant 0 : i32
    %c0_i32_0 = arith.constant 0 : i32
    %c0_i32_1 = arith.constant 0 : i32
    return %arg0, %c0_i32, %c0_i32_0 : i32, i32, i32
  }
}

</mosaic_0001>

<bundles_post_ra>
// kernel: tpu_custom_call.1
= control target key start
LH: loop header
LB: loop body
LE: loop exit
PB: predicated region body
PF: predicated region fallthrough
CT: control target
= control target key end

     0   :  { %9 = vsyncpa [#allocation3], 0  ;;  %s1278_s0 = inlined_call_operand.hbm [shape: bf16[512,128], index: 0, kind: input, shape index: {}]   ;;  %s1279_s1 = inlined_call_operand.hbm [shape: bf16[128,128], index: 1, kind: input, shape index: {}]   ;;  %s1280_s2 = inlined_call_operand.hbm [shape: bf16[512,128], index: 2, kind: output, shape index: {0}]   ;;  %s1281_s3 = inlined_call_operand.hbm [shape: f32[4,2,128], index: 3, kind: output, shape index: {1}]  }
   0x1   :  { %11 = vsyncpa [#allocation3 + $0x1], 0 }
   0x2   :  { %12 = vsyncpa [#allocation6], 0 }
   0x3   :  { %13 = vsyncpa [#allocation4], 0 }
   0x4   :  { %15 = vsyncpa [#allocation4 + $0x1], 0 }
   0x5   :  { %16 = vsyncpa [#allocation9], 0 }
   0x6   :  { %18 = vsyncpa [#allocation9 + $0x1], 0  ;;  %s1068_s12 = smov 0   ;;  %s1070_s13 = smov 0  }
   0x7   :  { %s1072_s14 = smov 0   ;;  %s1074_s15 = smov 0  }
   0x8 LB: > { %s1089_s16 = sadd.s32 4294967295, %s1041_s15   ;;  %s641_s17 = sadd.s32 4294967294, %s1041_s15   ;;  %s1041_s15 = sphi %s1074_s15, %s1290_s15   ;;  %s1037_s14 = sphi %s1072_s14, %s1289_s14   ;;  %s1033_s13 = sphi %s1070_s13, %s1288_s13   ;;  %s1029_s12 = sphi %s1068_s12, %s1287_s12  }
   0x9   : > { %p44_p0 = scmp.ne.s32.totalorder %s1033_s13, %s1029_s12  ;;  %p45_p1 = scmp.eq.s32.totalorder %s1089_s16, 0 }
   0xa   : > { %p89_p2 = scmp.eq.s32.totalorder %s1089_s16, 3  ;;  %p95_p3 = scmp.eq.s32.totalorder %s641_s17, 3 }
   0xb   : > { %p1098_p4 = por %p45_p1, %p44_p0  ;;  %p642_p5 = scmp.ge.s32.totalorder %s1041_s15, 1 }
   0xc   : > { %p1103_p6 = por %p95_p3, %p44_p0  ;;  %p128_p7 = scmp.lt.s32.totalorder %s1041_s15, 5 }
   0xd   : > { %s139_s22 = sshll.u32 %s1279_s1, 4  ;;  %s1043_s24 = smov [#allocation5]   ;;  %s140_s22 = int_to_ptr.hbm [resolvable:$true] %s139_s22 }
   0xe   : > { %p1111_p8 = pnand %p642_p5, %p128_p7  ;;  %s141_s25 = sshll.u32 %s1043_s24, 4  ;;  %s142_s25 = int_to_ptr.vmem [resolvable:$true] %s141_s25 }
   0xf   : > { %s1120_s26 = sadd.s32 1, %s1041_s15   ;;  %s1044_s27 = smov 64  }
  0x10   : > { %p823_p9 = pneg %p1111_p8  ;;  %s1045_s28 = smov 4  }
  0x11   : > { %s28_s29 = ssub.s32 %s1041_s15, %s1120_s26  ;;  %s31_s30 = sadd.s32 1, %s1037_s14 }
  0x12   : > { %p824_p10 = pnand %p823_p9, %p45_p1  ;;  %p29_p11 = scmp.eq.s32.totalorder %s28_s29, 0 }
  0x13   : > { %p38_p12 = scmp.ne.s32.totalorder %s1037_s14, %s1033_s13  ;;  %p39_p13 = scmp.eq.s32.totalorder %s1041_s15, 0 }
  0x14   : > { %826 = dma.hbm_to_vmem [thread:$0]  (!%p824_p10), %s140_s22, 1024, %s142_s25, [#allocation6], %s1044_s27, %s1044_s27, %s1045_s28  }
  0x15   : > { %s1132_s4 = scalar_select %p29_p11, %s1037_s14, %s31_s30  }
  0x16   : > { %p1136_p0 = por %p89_p2, %p38_p12  ;;  %p839_p3 = scmp.lt.s32.totalorder %s1041_s15, 4 }
  0x17   : > { %s155_s6 = sand.u32 1, %s1037_s14   ;;  %s724_s7 = sshll.u32 %s1041_s15, 6 }
  0x18   : > { %p40_p5 = por %p39_p13, %p38_p12  ;;  %s645_s8 = sshll.u32 %s155_s6, 6 }
  0x19   : > { %s164_s11 = scalar_lea.hbm %s1278_s0, %s724_s7  ;;  %s159_s20 = scalar_lea.vmem [#allocation2], %s645_s8 }
  0x1a   : > { %s165_s17 = sshll.u32 %s164_s11, 4  ;;  %s167_s21 = sshll.u32 %s159_s20, 4  ;;  %s166_s17 = int_to_ptr.hbm [resolvable:$true] %s165_s17  ;;  %s168_s21 = int_to_ptr.vmem [resolvable:$true] %s167_s21 }
  0x1b   : > { %p1146_p7 = pnand %p839_p3, %p40_p5  ;;  %s156_s24 = scalar_lea.sflag [#allocation3], %s155_s6 }
  0x1c   : > { %s909_s25 = sshra.s32 %s166_s17, 4  ;;  %s916_s8 = scalar_lea.hbm %s1278_s0, 256  ;;  %s910_s25 = int_to_ptr.hbm [resolvable:$true] %s909_s25 }
  0x1d   : > { %s911_s29 = scalar_lea.hbm %s910_s25, 64  ;;  %p913_p9 = pneg %p1146_p7 }
  0x1e   : > { %p912_p2 = scmp.ne.s32.totalorder %s910_s25, %s911_s29  ;;  %p917_p12 = scmp.lt.s32.totalorder %s910_s25, %s1278_s0 }
  0x1f   : > { %p918_p13 = scmp.lt.s32.totalorder %s916_s8, %s911_s29 }
  0x20   : > { %p914_p10 = pnand %p913_p9, %p912_p2 }
  0x21   : > { %p919_p3 = por %p918_p13, %p917_p12 }
  0x22   : > { %p915_p11 = pneg %p914_p10 }
  0x24   : > { %p920_p5 = pnand %p919_p3, %p915_p11 }
  0x26   : > { %923 = shalt.err (!%p920_p5)
}
  0x27   : > { %830 = dma.hbm_to_vmem [thread:$0]  (!%p1146_p7), %s166_s17, 1024, %s168_s21, %s156_s24, %s1044_s27, %s1044_s27, %s1045_s28  }
  0x28   : > { %179 = sbr.rel (%p1111_p8) target bundleno = 273 (0x111), region = 28  ;;  %s1166_s6 = sand.u32 (!%p1111_p8), 1, %s1033_s13  }
  0x29   : > { %s649_s11 = sshll.u32 (!%p1111_p8), %s1166_s6, 6  ;;  %s182_s20 = scalar_lea.sflag (!%p1111_p8), [#allocation3], %s1166_s6 }
  0x2a   : > { %s1172_s25 = scalar_lea.vmem (!%p1111_p8), [#allocation2], %s649_s11 }
  0x2d   : > { %1012 = dma.done.wait (%p1098_p4), %s182_s20, 1024  }
  0x2e   : > { %1014 = vsyncadd (%p1098_p4), %s182_s20, 4294966272 }
  0x2f   : > { %1016 = dma.done.wait (%p45_p1), [#allocation6], 1024  }
  0x30   : > { %1018 = vsyncadd (%p45_p1), [#allocation6], 4294966272  ;;  %v740_v0 = vld [vmem:[#allocation5 + $0x38] sm:$0xff]  ;;  %v739_v1 = vld [vmem:[#allocation5 + $0x30] sm:$0xff]  ;;  %s1194_s18 = scalar_lea.vmem [#allocation7], %s649_s11  ;;  %s741_s23 = sshll.u32 %s1089_s16, 6 }
  0x31   : > { %349 = vmatpush.bf16.msra.mxu0 %v740_v0  ;;  %789 = vmatpush.bf16.msra.mxu1 %v740_v0  ;;  %v738_v2 = vld [vmem:[#allocation5 + $0x28] sm:$0xff]  ;;  %v737_v3 = vld [vmem:[#allocation5 + $0x20] sm:$0xff]  ;;  %v736_v4 = vld [vmem:[#allocation5 + $0x18] sm:$0xff]  ;;  %s507_s17 = scalar_lea.hbm %s1280_s2, %s741_s23  ;;  %s508_s21 = sshll.u32 %s1194_s18, 4  ;;  %s1217_s21 = int_to_ptr.vmem [resolvable:$true] %s508_s21 }
  0x32   : > { %790 = vmatpush.bf16.msra.mxu2 %v740_v0  ;;  %791 = vmatpush.bf16.msra.mxu3 %v740_v0  ;;  %v735_v5 = vld [vmem:[#allocation5 + $0x10] sm:$0xff]  ;;  %v734_v6 = vld [vmem:[#allocation5 + $0x8] sm:$0xff]  ;;  %v733_v7 = vld [vmem:[#allocation5] sm:$0xff]  ;;  %s510_s22 = sshll.u32 %s507_s17, 4  ;;  %s491_s24 = scalar_lea.sflag [#allocation4], %s1166_s6  ;;  %s511_s22 = int_to_ptr.hbm [resolvable:$true] %s510_s22 }
  0x33   : > { %v725_v8 = vld [vmem:[%s1172_s25] sm:$0xff]  ;;  %v727_v9 = vld [vmem:[%s1172_s25 + $0x10] sm:$0xff]  ;;  %v726_v12 = vld [vmem:[%s1172_s25 + $0x8] sm:$0xff]  ;;  %s953_s29 = sshra.s32 %s511_s22, 4  ;;  %s959_s9 = scalar_lea.hbm %s1280_s2, 256  ;;  %s954_s29 = int_to_ptr.hbm [resolvable:$true] %s953_s29 }
  0x34   : > { %v729_v10 = vld [vmem:[%s1172_s25 + $0x20] sm:$0xff]  ;;  %v731_v11 = vld [vmem:[%s1172_s25 + $0x30] sm:$0xff]  ;;  %v728_v13 = vld [vmem:[%s1172_s25 + $0x18] sm:$0xff]  ;;  %s955_s30 = scalar_lea.hbm %s954_s29, 64  ;;  %p960_p7 = scmp.lt.s32.totalorder %s954_s29, %s1280_s2 }
  0x35   : > { %350 = vmatpush.bf16.msra.mxu0 %v739_v1  ;;  %792 = vmatpush.bf16.msra.mxu1 %v739_v1  ;;  %v730_v14 = vld [vmem:[%s1172_s25 + $0x28] sm:$0xff]  ;;  %v732_v15 = vld [vmem:[%s1172_s25 + $0x38] sm:$0xff]  ;;  %p956_p1 = scmp.ne.s32.totalorder %s954_s29, %s955_s30  ;;  %p961_p2 = scmp.lt.s32.totalorder %s959_s9, %s955_s30 }
  0x36   : > { %793 = vmatpush.bf16.msra.mxu2 %v739_v1  ;;  %794 = vmatpush.bf16.msra.mxu3 %v739_v1 }
  0x37   : > { %p957_p4 = pnand %p956_p1, %p1136_p0  ;;  %p962_p9 = por %p961_p2, %p960_p7 }
  0x39   : > { %351 = vmatpush.bf16.msra.mxu0 %v738_v2  ;;  %795 = vmatpush.bf16.msra.mxu1 %v738_v2  ;;  %p958_p8 = pneg %p957_p4 }
  0x3a   : > { %796 = vmatpush.bf16.msra.mxu2 %v738_v2  ;;  %797 = vmatpush.bf16.msra.mxu3 %v738_v2 }
  0x3b   : > { %p963_p10 = pnand %p962_p9, %p958_p8 }
  0x3d   : > { %352 = vmatpush.bf16.msra.mxu0 %v737_v3  ;;  %798 = vmatpush.bf16.msra.mxu1 %v737_v3 }
  0x3e   : > { %799 = vmatpush.bf16.msra.mxu2 %v737_v3  ;;  %800 = vmatpush.bf16.msra.mxu3 %v737_v3 }
  0x41   : > { %353 = vmatpush.bf16.msra.mxu0 %v736_v4  ;;  %801 = vmatpush.bf16.msra.mxu1 %v736_v4 }
  0x42   : > { %802 = vmatpush.bf16.msra.mxu2 %v736_v4  ;;  %803 = vmatpush.bf16.msra.mxu3 %v736_v4 }
  0x45   : > { %354 = vmatpush.bf16.msra.mxu0 %v735_v5  ;;  %804 = vmatpush.bf16.msra.mxu1 %v735_v5 }
  0x46   : > { %805 = vmatpush.bf16.msra.mxu2 %v735_v5  ;;  %806 = vmatpush.bf16.msra.mxu3 %v735_v5 }
  0x49   : > { %355 = vmatpush.bf16.msra.mxu0 %v734_v6  ;;  %807 = vmatpush.bf16.msra.mxu1 %v734_v6 }
  0x4a   : > { %808 = vmatpush.bf16.msra.mxu2 %v734_v6  ;;  %809 = vmatpush.bf16.msra.mxu3 %v734_v6 }
  0x4d   : > { %356 = vmatpush.bf16.msra.mxu0 %v733_v7  ;;  %810 = vmatpush.bf16.msra.mxu1 %v733_v7 }
  0x4e   : > { %811 = vmatpush.bf16.msra.mxu2 %v733_v7  ;;  %812 = vmatpush.bf16.msra.mxu3 %v733_v7 }
  0x50   : > { %357 = vmatmul.bf16.vlgmr.msra.gmra.mxu0 %v725_v8  ;;  %367 = vmatmul.bf16.vlgmr.msra.gmra.mxu1 %v727_v9 }
  0x51   : > { %377 = vmatmul.bf16.vlgmr.msra.gmra.mxu2 %v729_v10  ;;  %387 = vmatmul.bf16.vlgmr.msra.gmra.mxu3 %v731_v11 }
  0x60   : > { %362 = vmatmul.bf16.gmra.mxu0 %v726_v12  ;;  %372 = vmatmul.bf16.gmra.mxu1 %v728_v13 }
  0x61   : > { %382 = vmatmul.bf16.gmra.mxu2 %v730_v14  ;;  %392 = vmatmul.bf16.gmra.mxu3 %v732_v15 }
  0xcd   : > { %v358_v16 = vpop.f32.mrf.mxu0  ;;  %v368_v17 = vpop.f32.mrf.mxu1 }
  0xce   : > { %v452_v31 = vmul.f32 %v358_v16, %v358_v16  ;;  %v456_v45 = vmul.f32 %v368_v17, %v368_v17 }
  0xd4   : > { %v378_v18 = vpop.f32.mrf.mxu2  ;;  %v1190_v19 = vpop.f32.mrf.mxu3 }
  0xd5   : > { %v360_v20 = vpop.f32.mrf.mxu0  ;;  %v370_v21 = vpop.f32.mrf.mxu1  ;;  %v460_v61 = vmul.f32 %v378_v18, %v378_v18 }
  0xd6   : > { %v745_v22 = vpack.c.bf16 %v360_v20, %v358_v16  ;;  %v755_v23 = vpack.c.bf16 %v370_v21, %v368_v17  ;;  %v453_v30 = vmul.f32 %v360_v20, %v360_v20  ;;  %v430_v33 = vadd.f32 %v360_v20, %v358_v16 }
  0xd7   : > { %v457_v48 = vmul.f32 %v370_v21, %v370_v21 }
  0xd8   : > { %746 = vst [vmem:[%s1194_s18] sm:$0xff] %v745_v22   ;;  %v468_v34 = vadd.f32 %v453_v30, %v452_v31 }
  0xd9   : > { %783 = vst [vmem:[%s1194_s18 + $0x10] sm:$0xff] %v755_v23  }
  0xdc   : > { %v1198_v24 = vpop.f32.mrf.mxu2  ;;  %v1200_v25 = vpop.f32.mrf.mxu3 }
  0xdd   : > { %v363_v26 = vpop.f32.mrf.mxu0  ;;  %v373_v27 = vpop.f32.mrf.mxu1  ;;  %v765_v28 = vpack.c.bf16 %v1198_v24, %v378_v18  ;;  %v775_v29 = vpack.c.bf16 %v1200_v25, %v1190_v19 }
  0xde   : > { %v454_v32 = vmul.f32 %v363_v26, %v363_v26  ;;  %v431_v35 = vadd.f32 %v430_v33, %v363_v26  ;;  %v458_v51 = vmul.f32 %v373_v27, %v373_v27 }
  0xdf   : > { %785 = vst [vmem:[%s1194_s18 + $0x20] sm:$0xff] %v765_v28  }
  0xe0   : > { %787 = vst [vmem:[%s1194_s18 + $0x30] sm:$0xff] %v775_v29   ;;  %v469_v38 = vadd.f32 %v468_v34, %v454_v32 }
  0xe4   : > { %v383_v36 = vpop.f32.mrf.mxu2  ;;  %v1207_v37 = vpop.f32.mrf.mxu3 }
  0xe5   : > { %v365_v39 = vpop.f32.mrf.mxu0  ;;  %v375_v40 = vpop.f32.mrf.mxu1 }
  0xe6   : > { %v750_v41 = vpack.c.bf16 %v365_v39, %v363_v26  ;;  %v432_v42 = vadd.f32 %v431_v35, %v365_v39  ;;  %v455_v43 = vmul.f32 %v365_v39, %v365_v39  ;;  %v760_v44 = vpack.c.bf16 %v375_v40, %v373_v27 }
  0xe7   : > { %v459_v59 = vmul.f32 %v375_v40, %v375_v40 }
  0xe8   : > { %782 = vst [vmem:[%s1194_s18 + $0x8] sm:$0xff] %v750_v41   ;;  %v433_v46 = vadd.f32 %v432_v42, %v368_v17  ;;  %v470_v47 = vadd.f32 %v469_v38, %v455_v43 }
  0xe9   : > { %784 = vst [vmem:[%s1194_s18 + $0x18] sm:$0xff] %v760_v44  }
  0xea   : > { %v471_v49 = vadd.f32 %v470_v47, %v456_v45  ;;  %v434_v50 = vadd.f32 %v433_v46, %v370_v21 }
  0xec   : > { %v435_v52 = vadd.f32 %v434_v50, %v373_v27  ;;  %v472_v53 = vadd.f32 %v471_v49, %v457_v48  ;;  %v385_v54 = vpop.f32.mrf.mxu2  ;;  %v395_v55 = vpop.f32.mrf.mxu3 }
  0xed   : > { %v770_v56 = vpack.c.bf16 %v385_v54, %v383_v36  ;;  %v780_v57 = vpack.c.bf16 %v395_v55, %v1207_v37 }
  0xee   : > { %v436_v58 = vadd.f32 %v435_v52, %v375_v40  ;;  %v473_v60 = vadd.f32 %v472_v53, %v458_v51 }
  0xef   : > { %786 = vst [vmem:[%s1194_s18 + $0x28] sm:$0xff] %v770_v56  }
  0xf0   : > { %v437_v62 = vadd.f32 %v436_v58, %v378_v18  ;;  %v474_v63 = vadd.f32 %v473_v60, %v459_v59  ;;  %788 = vst [vmem:[%s1194_s18 + $0x38] sm:$0xff] %v780_v57  }
  0xf1   : > { %966 = shalt.err (!%p963_p10)
}
  0xf2   : > { %s1046_s20 = smov 64   ;;  %s1047_s25 = smov 4   ;;  %v461_v0 = vmul.f32 %v1198_v24, %v1198_v24  ;;  %v475_v1 = vadd.f32 %v474_v63, %v460_v61  ;;  %v438_v2 = vadd.f32 %v437_v62, %v1198_v24  ;;  %v462_v4 = vmul.f32 %v383_v36, %v383_v36 }
  0xf3   : > { %819 = dma.vmem_to_hbm [thread:$0]  (%p1136_p0), %s1217_s21, 1024, %s511_s22, %s491_s24, %s1046_s20, %s1046_s20, %s1047_s25   ;;  %v463_v8 = vmul.f32 %v385_v54, %v385_v54  ;;  %v464_v9 = vmul.f32 %v1190_v19, %v1190_v19  ;;  %v465_v12 = vmul.f32 %v1200_v25, %v1200_v25  ;;  %v466_v16 = vmul.f32 %v1207_v37, %v1207_v37 }
  0xf4   : > { %v439_v3 = vadd.f32 %v438_v2, %v383_v36  ;;  %v476_v5 = vadd.f32 %v475_v1, %v461_v0  ;;  %v467_v21 = vmul.f32 %v395_v55, %v395_v55  ;;  %s652_s18 = sshll.u32 %s1166_s6, 1  ;;  %s721_s23 = sshll.u32 %s1089_s16, 1 }
  0xf5   : > { %s523_s17 = scalar_lea.hbm %s1281_s3, %s721_s23  ;;  %s218_s21 = scalar_lea.vmem [#allocation8], %s652_s18 }
  0xf6   : > { %v477_v6 = vadd.f32 %v476_v5, %v462_v4  ;;  %v440_v7 = vadd.f32 %v439_v3, %v385_v54  ;;  %s525_s22 = sshll.u32 %s218_s21, 4  ;;  %s527_s24 = sshll.u32 %s523_s17, 4  ;;  %s526_s22 = int_to_ptr.vmem [resolvable:$true] %s525_s22  ;;  %s528_s24 = int_to_ptr.hbm [resolvable:$true] %s527_s24 }
  0xf7   : > { %s496_s16 = scalar_lea.sflag [#allocation9], %s1166_s6  ;;  %s981_s29 = sshra.s32 %s528_s24, 4  ;;  %s982_s29 = int_to_ptr.hbm [resolvable:$true] %s981_s29 }
  0xf8   : > { %v441_v10 = vadd.f32 %v440_v7, %v1190_v19  ;;  %v478_v11 = vadd.f32 %v477_v6, %v463_v8  ;;  %s983_s30 = scalar_lea.hbm %s982_s29, 2  ;;  %s987_s9 = scalar_lea.hbm %s1281_s3, 8 }
  0xf9   : > { %p984_p11 = scmp.ne.s32.totalorder %s982_s29, %s983_s30  ;;  %p988_p3 = scmp.lt.s32.totalorder %s982_s29, %s1281_s3 }
  0xfa   : > { %v479_v13 = vadd.f32 %v478_v11, %v464_v9  ;;  %v442_v14 = vadd.f32 %v441_v10, %v1200_v25  ;;  %p989_p5 = scmp.lt.s32.totalorder %s987_s9, %s983_s30 }
  0xfb   : > { %p985_p12 = pnand %p984_p11, %p1136_p0 }
  0xfc   : > { %v443_v15 = vadd.f32 %v442_v14, %v1207_v37  ;;  %v480_v17 = vadd.f32 %v479_v13, %v465_v12  ;;  %p990_p1 = por %p989_p5, %p988_p3 }
  0xfd   : > { %p986_p13 = pneg %p985_p12 }
  0xfe   : > { %v481_v18 = vadd.f32 %v480_v17, %v466_v16  ;;  %v444_v20 = vadd.f32 %v443_v15, %v395_v55 }
  0xff   : > { %p991_p4 = pnand %p990_p1, %p986_p13 }
 0x100   : > { %v445_v22 = vrot.slane %v444_v20, 4  ;;  %v482_v23 = vadd.f32 %v481_v18, %v467_v21 }
 0x102   : > { %v446_v19 = vadd.f32 %v445_v22, %v444_v20  ;;  %v483_v24 = vrot.slane %v482_v23, 4 }
 0x104   : > { %v447_v26 = vrot.slane %v446_v19, 2  ;;  %v484_v27 = vadd.f32 %v483_v24, %v482_v23 }
 0x106   : > { %v448_v28 = vadd.f32 %v447_v26, %v446_v19  ;;  %v485_v25 = vrot.slane %v484_v27, 2 }
 0x108   : > { %v449_v29 = vrot.slane %v448_v28, 1  ;;  %v486_v30 = vadd.f32 %v485_v25, %v484_v27 }
 0x10a   : > { %v450_v31 = vadd.f32 %v449_v29, %v448_v28  ;;  %v487_v32 = vrot.slane %v486_v30, 1 }
 0x10c   : > { %v488_v33 = vadd.f32 %v487_v32, %v486_v30  ;;  %451 = vst [vmem:[%s218_s21] sm:$0x1] %v450_v31 }
 0x10e   : > { %489 = vst [vmem:[%s218_s21 + $0x1] sm:$0x1] %v488_v33 }
 0x10f   : > { %994 = shalt.err (!%p991_p4)
}
 0x110   : > { %820 = dma.vmem_to_hbm [thread:$0]  (%p1136_p0), %s526_s22, 32, %s528_s24, %s496_s16  }
 0x111 PF: > { %p841_p8 = scmp.ge.s32.totalorder %s1041_s15, 2  ;;  %s539_s6 = sand.u32 1, %s1029_s12  }
 0x112   : > { %s540_s20 = scalar_lea.sflag [#allocation4], %s539_s6 }
 0x113   : > { %p832_p7 = pnand %p841_p8, %p1103_p6 }
 0x115   : > { %p833_p2 = pneg %p832_p7 }
 0x117   : > { %1020 = dma.done.wait (%p833_p2), %s540_s20, 1024  }
 0x118   : > { %1022 = vsyncadd (%p833_p2), %s540_s20, 4294966272  ;;  %s550_s25 = scalar_lea.sflag [#allocation9], %s539_s6 }
 0x119   : > { %1024 = dma.done.wait (%p833_p2), %s550_s25, 32  }
 0x11a   : > { %1026 = vsyncadd (%p833_p2), %s550_s25, 4294967264  ;;  %p21_p0 = scmp.ge.s32.totalorder %s1120_s26, 6   ;;  %s1287_s12 = smov %s1033_s13 }
 0x11b   : > { %s1288_s13 = smov %s1037_s14  ;;  %s1289_s14 = smov %s1132_s4 }
 0x11c   : > { %s1290_s15 = smov %s1120_s26  ;;  %23 = sbr.rel (!%p21_p0) target bundleno = 8 (0x8), region = 94 }
 0x121   :  { %556 = vsyncpa [#allocation3], 1 }
 0x122   :  { %558 = vsyncpa [#allocation3 + $0x1], 1 }
 0x123   :  { %559 = vsyncpa [#allocation6], 1 }
 0x124   :  { %560 = vsyncpa [#allocation4], 1 }
 0x125   :  { %562 = vsyncpa [#allocation4 + $0x1], 1 }
 0x126   :  { %563 = vsyncpa [#allocation9], 1 }
 0x127   :  { %565 = vsyncpa [#allocation9 + $0x1], 1 }

</bundles_post_ra>
